<compile_context>
chip_gen: v5e
topology: v5e:2x2
jax: 0.10.0
libtpu: 0.0.40
codegen_flags: <defaults>
</compile_context>

<pallas_src>
import jax
import jax.numpy as jnp
from jax.experimental import pallas as pl
from jax.experimental.pallas import tpu as pltpu

_LANES = 128
_SUB = 8


def _fold_rows(x):
    """Sum an (RB, 128) f32 array down to an (8, 128) partial-sum slab.

    When RB is a multiple of 8 this is pure VPU tile-adds (no cross-sublane work).
    Otherwise (tiny full-extent blocks) fall back to a sublane reduce into row 0.
    """
    rb, lanes = x.shape
    if rb % _SUB == 0:
        if rb == _SUB:
            return x
        return jnp.sum(x.reshape(rb // _SUB, _SUB, lanes), axis=0)
    col = jnp.sum(x, axis=0, keepdims=True)                               # (1, lanes)
    row0 = jax.lax.broadcasted_iota(jnp.int32, (_SUB, lanes), 0) == 0     # (8, lanes)
    return jnp.where(row0, col, 0.0)                                      # row 0 = col


def _edge_loss_partial_kernel(pred_ref, lab_ref, out_ref):
    """pred_ref: (2, RB, 128) logits; lab_ref: (RB, 128) integer labels.

    out_ref: (4, 8, 128) f32 partial sums owned exclusively by this (i, n) step:
      out[0] = count(label == 0)      out[1] = count(label == 1)
      out[2] = sum NLL where label==0 out[3] = sum NLL where label==1
    Pixels with any other label (ignore_index=255, padding) contribute nothing.
    """
    l0 = pred_ref[0].astype(jnp.float32)          # (RB, 128)
    l1 = pred_ref[1].astype(jnp.float32)          # (RB, 128)
    lab = lab_ref[...]                            # (RB, 128) int

    # Compute the class masks once, reuse for counts and NLL terms.
    is0 = lab == 0
    is1 = lab == 1

    # 2-class log-softmax: nll(class0) = softplus(d), nll(class1) = softplus(d) - d
    d = l1 - l0
    # TODO(synk): jnp.log1p would save one VPU add on v7x if supported by lowering.
    sp = jnp.maximum(d, 0.0) + jnp.log(1.0 + jnp.exp(-jnp.abs(d)))
    zero = jnp.zeros_like(d)

    # NOTE: keep jnp.where (select) for the NLL terms -- padded / out-of-bounds
    # pred rows may hold NaN/Inf and mask*x would poison the sums.
    out_ref[0] = _fold_rows(is0.astype(jnp.float32))
    out_ref[1] = _fold_rows(is1.astype(jnp.float32))
    out_ref[2] = _fold_rows(jnp.where(is0, sp, zero))
    out_ref[3] = _fold_rows(jnp.where(is1, sp - d, zero))


def _pick_block_rows(R, target, min_blocks):
    """Rows per block: prefer a multiple-of-32 divisor of R near `target`.

    A multiple-of-32 divisor keeps int8/uint8 label blocks on the packed
    (32,128) tile and avoids any ragged-tail handling on the hot path.
    """
    cap = min(target, R)
    if min_blocks > 1 and R >= 64:
        cap = min(cap, max(32, R // min_blocks))   # force >=2 parallel blocks
    cap32 = (cap // 32) * 32
    best = 0
    for d in range(32, cap32 + 1, 32):
        if R % d == 0:
            best = d
    if best:
        return best
    if R <= target:
        return R                  # single full-extent block (always a legal tile)
    return max(32, cap32)         # ragged: labels get row-padded with ignore_index


def edge_loss(pred, label, ignore_index=255, block_rows=2048):
    """Weighted binary cross-entropy edge loss (matches PyTorch Edge_loss.forward)."""
    N, C, H, W = pred.shape
    assert C == 2, "Edge_loss uses a 2-element class-weight vector -> C must be 2"

    hw = H * W
    pred3 = pred.reshape(N, C, hw)
    # Keep the producer's label dtype (uint8/int8/int32): no wrapper astype, so a
    # narrow producer dtype cuts label HBM traffic 4x inside the kernel.
    lab2 = label.reshape(N, hw)

    lane_pad = (-hw) % _LANES
    if lane_pad:
        # Rare fallback (H*W not a multiple of 128): pad lanes, label pad = ignore.
        pred3 = jnp.pad(pred3, ((0, 0), (0, 0), (0, lane_pad)))
        lab2 = jnp.pad(lab2, ((0, 0), (0, lane_pad)), constant_values=ignore_index)
        hw += lane_pad

    R = hw // _LANES
    pred4 = pred3.reshape(N, C, R, _LANES)        # free reshape (row-major)
    lab3 = lab2.reshape(N, R, _LANES)             # free reshape

    min_blocks = 2 if N == 1 else 1               # keep >=2 parallel grid steps (v7x)
    rb = _pick_block_rows(R, block_rows, min_blocks)
    nrb = pl.cdiv(R, rb)

    row_pad = nrb * rb - R
    if row_pad:
        # Ragged fallback: pad ONLY the (small) label array with ignore_index; the
        # pred boundary block reads garbage tail rows that the selects drop.
        lab3 = jnp.pad(lab3, ((0, 0), (0, row_pad), (0, 0)),
                       constant_values=ignore_index)

    pixels = N * R * _LANES
    out_bytes = nrb * N * 4 * _SUB * _LANES * 4
    cost = pl.CostEstimate(
        flops=16 * pixels,
        transcendentals=2 * pixels,
        bytes_accessed=pred4.size * pred4.dtype.itemsize
                       + lab3.size * lab3.dtype.itemsize
                       + out_bytes)

    # Only raise the scoped-VMEM limit when the double-buffered footprint actually
    # needs it (keeps v5e's 16 MiB default happy for the common block_rows=2048).
    pred_blk = C * rb * _LANES * pred4.dtype.itemsize
    lab_blk = rb * _LANES * lab3.dtype.itemsize
    out_blk = 4 * _SUB * _LANES * 4
    est = 2 * (pred_blk + lab_blk + out_blk)
    cp_kwargs = dict(dimension_semantics=("parallel", "parallel"))
    if est > 12 * (1 << 20):
        cp_kwargs["vmem_limit_bytes"] = min(2 * est + (1 << 20), 48 << 20)

    partial_sums = pl.pallas_call(
        _edge_loss_partial_kernel,
        out_shape=jax.ShapeDtypeStruct((nrb, N, 4, _SUB, _LANES), jnp.float32),
        grid=(nrb, N),
        in_specs=[
            pl.BlockSpec((None, C, rb, _LANES), lambda i, n: (n, 0, i, 0)),
            pl.BlockSpec((None, rb, _LANES), lambda i, n: (n, i, 0)),
        ],
        out_specs=pl.BlockSpec((None, None, 4, _SUB, _LANES),
                               lambda i, n: (i, n, 0, 0, 0)),
        compiler_params=pltpu.CompilerParams(**cp_kwargs),
        cost_estimate=cost,
    )(pred4, lab3)

    # Tiny epilogue in JAX: reduce the (nrb, N, 4, 8, 128) partials to 4 scalars.
    sums = jnp.sum(partial_sums, axis=(0, 1, 3, 4))
    neg_num, pos_num, s0, s1 = sums[0], sums[1], sums[2], sums[3]

    total = pos_num + neg_num
    weight_pos = neg_num / total
    weight_neg = pos_num / total
    numer = weight_neg * s0 + weight_pos * s1
    denom = weight_neg * neg_num + weight_pos * pos_num
    # Guard the degenerate all-ignored case (PyTorch would produce NaN here).
    return jnp.where(denom > 0, numer / jnp.where(denom > 0, denom, 1.0),
                     jnp.float32(0.0))


def _reference(pred, label):
    """Pure-JAX reference mirroring the PyTorch forward (for verification)."""
    logp = jax.nn.log_softmax(pred.astype(jnp.float32), axis=1)
    pos = jnp.sum(label == 1).astype(jnp.float32)
    neg = jnp.sum(label == 0).astype(jnp.float32)
    wpos = neg / (pos + neg)
    wneg = pos / (pos + neg)
    nll0 = -logp[:, 0]
    nll1 = -logp[:, 1]
    numer = (wneg * jnp.sum(jnp.where(label == 0, nll0, 0.0))
             + wpos * jnp.sum(jnp.where(label == 1, nll1, 0.0)))
    denom = wneg * neg + wpos * pos
    return numer / denom


if __name__ == "__main__":
    key = jax.random.PRNGKey(0)
    k1, k2, k3, k4 = jax.random.split(key, 4)

    # Test 1: small spec shape, int32 labels (PyTorch-long-like), full-extent block.
    N, C, H, W = 2, 2, 16, 16
    pred = jax.random.normal(k1, (N, C, H, W), dtype=jnp.float32)
    u = jax.random.uniform(k2, (N, H, W))
    label = jnp.where(u < 0.45, 0, jnp.where(u < 0.90, 1, 255)).astype(jnp.int32)

    loss = jax.jit(edge_loss)(pred, label)
    jax.block_until_ready(loss)
    ref = _reference(pred, label)
    assert jnp.allclose(loss, ref, rtol=1e-5, atol=1e-5), (loss, ref)

    # Test 2: larger spatial + uint8 labels (narrow-dtype path, rb multiple of 32).
    N2, H2, W2 = 2, 64, 64
    pred2 = jax.random.normal(k3, (N2, C, H2, W2), dtype=jnp.float32)
    u2 = jax.random.uniform(k4, (N2, H2, W2))
    label2 = jnp.where(u2 < 0.45, 0, jnp.where(u2 < 0.90, 1, 255)).astype(jnp.uint8)

    loss2 = jax.jit(edge_loss)(pred2, label2)
    jax.block_until_ready(loss2)
    ref2 = _reference(pred2, label2)
    assert jnp.allclose(loss2, ref2, rtol=1e-5, atol=1e-5), (loss2, ref2)

    print("KERNEL_OK")
</pallas_src>

<mosaic_0001>
module attributes {stable_mosaic.version = 11 : i64} {
  func.func @_edge_loss_partial_kernel(%arg0: i32, %arg1: i32, %arg2: memref<1x2x2x128xf32, #tpu.memory_space<vmem>>, %arg3: memref<1x2x128xi32, #tpu.memory_space<vmem>>, %arg4: memref<1x1x4x8x128xf32, #tpu.memory_space<vmem>>) attributes {dimension_semantics = [#tpu.dimension_semantics<parallel>, #tpu.dimension_semantics<parallel>], iteration_bounds = array<i64: 1, 2>, scalar_prefetch = 0 : i64, scratch_operands = 0 : i64, tpu.core_type = #tpu.core_type<tc>, window_params = [{transform_indices = @transform_0, window_bounds = array<i64: 1, 2, 2, 128>}, {transform_indices = @transform_1, window_bounds = array<i64: 1, 2, 128>}, {transform_indices = @transform_2, window_bounds = array<i64: 1, 1, 4, 8, 128>}]} {
    %c0 = arith.constant 0 : index
    %c0_0 = arith.constant 0 : index
    %c0_1 = arith.constant 0 : index
    %c0_2 = arith.constant 0 : index
    %0 = vector.load %arg2[%c0, %c0_0, %c0_1, %c0_2] : memref<1x2x2x128xf32, #tpu.memory_space<vmem>>, vector<1x1x2x128xf32>
    %1 = vector.shape_cast %0 : vector<1x1x2x128xf32> to vector<2x128xf32>
    %c0_3 = arith.constant 0 : index
    %c1 = arith.constant 1 : index
    %c0_4 = arith.constant 0 : index
    %c0_5 = arith.constant 0 : index
    %2 = vector.load %arg2[%c0_3, %c1, %c0_4, %c0_5] : memref<1x2x2x128xf32, #tpu.memory_space<vmem>>, vector<1x1x2x128xf32>
    %3 = vector.shape_cast %2 : vector<1x1x2x128xf32> to vector<2x128xf32>
    %c0_6 = arith.constant 0 : index
    %c0_7 = arith.constant 0 : index
    %c0_8 = arith.constant 0 : index
    %4 = vector.load %arg3[%c0_6, %c0_7, %c0_8] : memref<1x2x128xi32, #tpu.memory_space<vmem>>, vector<1x2x128xi32>
    %5 = vector.shape_cast %4 : vector<1x2x128xi32> to vector<2x128xi32>
    %c0_i32 = arith.constant 0 : i32
    %6 = vector.broadcast %c0_i32 : i32 to vector<2x128xi32>
    %7 = arith.cmpi eq, %5, %6 : vector<2x128xi32>
    %c1_i32 = arith.constant 1 : i32
    %8 = vector.broadcast %c1_i32 : i32 to vector<2x128xi32>
    %9 = arith.cmpi eq, %5, %8 : vector<2x128xi32>
    %10 = arith.subf %3, %1 : vector<2x128xf32>
    %cst = arith.constant 0.000000e+00 : f32
    %11 = vector.broadcast %cst : f32 to vector<2x128xf32>
    %12 = arith.maximumf %10, %11 : vector<2x128xf32>
    %13 = math.absf %10 : vector<2x128xf32>
    %cst_9 = arith.constant 0.000000e+00 : f32
    %14 = vector.broadcast %cst_9 : f32 to vector<2x128xf32>
    %15 = arith.subf %14, %13 : vector<2x128xf32>
    %16 = math.exp %15 : vector<2x128xf32>
    %cst_10 = arith.constant 1.000000e+00 : f32
    %17 = vector.broadcast %cst_10 : f32 to vector<2x128xf32>
    %18 = arith.addf %17, %16 : vector<2x128xf32>
    %19 = math.log %18 : vector<2x128xf32>
    %20 = arith.addf %12, %19 : vector<2x128xf32>
    %cst_11 = arith.constant 0.000000e+00 : f32
    %21 = vector.broadcast %cst_11 : f32 to vector<2x128xf32>
    %22 = arith.extui %7 : vector<2x128xi1> to vector<2x128xi32>
    %23 = arith.sitofp %22 : vector<2x128xi32> to vector<2x128xf32>
    %cst_12 = arith.constant dense<0.000000e+00> : vector<128xf32>
    %24 = vector.multi_reduction <add>, %23, %cst_12 [0] : vector<2x128xf32> to vector<128xf32>
    %25 = vector.shape_cast %24 : vector<128xf32> to vector<1x128xf32>
    %26 = tpu.iota {dimensions = array<i32: 0>} : vector<8x128xi32>
    %c0_i32_13 = arith.constant 0 : i32
    %27 = vector.broadcast %c0_i32_13 : i32 to vector<8x128xi32>
    %28 = arith.cmpi eq, %26, %27 : vector<8x128xi32>
    %cst_14 = arith.constant 0.000000e+00 : f32
    %29 = vector.shape_cast %25 : vector<1x128xf32> to vector<1x128xf32>
    %30 = vector.broadcast %29 : vector<1x128xf32> to vector<8x128xf32>
    %31 = vector.broadcast %cst_14 : f32 to vector<8x128xf32>
    %32 = arith.select %28, %30, %31 : vector<8x128xi1>, vector<8x128xf32>
    %c0_15 = arith.constant 0 : index
    %c0_16 = arith.constant 0 : index
    %c0_17 = arith.constant 0 : index
    %c0_18 = arith.constant 0 : index
    %c0_19 = arith.constant 0 : index
    %33 = vector.load %arg4[%c0_15, %c0_16, %c0_17, %c0_18, %c0_19] : memref<1x1x4x8x128xf32, #tpu.memory_space<vmem>>, vector<1x1x1x8x128xf32>
    %34 = vector.shape_cast %33 : vector<1x1x1x8x128xf32> to vector<8x128xf32>
    %35 = vector.shape_cast %32 : vector<8x128xf32> to vector<1x1x1x8x128xf32>
    tpu.vector_store %arg4[%c0_15, %c0_16, %c0_17, %c0_18, %c0_19], %35 {strides = array<i32>} : memref<1x1x4x8x128xf32, #tpu.memory_space<vmem>>, vector<1x1x1x8x128xf32>,
    %36 = arith.extui %9 : vector<2x128xi1> to vector<2x128xi32>
    %37 = arith.sitofp %36 : vector<2x128xi32> to vector<2x128xf32>
    %cst_20 = arith.constant dense<0.000000e+00> : vector<128xf32>
    %38 = vector.multi_reduction <add>, %37, %cst_20 [0] : vector<2x128xf32> to vector<128xf32>
    %39 = vector.shape_cast %38 : vector<128xf32> to vector<1x128xf32>
    %40 = tpu.iota {dimensions = array<i32: 0>} : vector<8x128xi32>
    %c0_i32_21 = arith.constant 0 : i32
    %41 = vector.broadcast %c0_i32_21 : i32 to vector<8x128xi32>
    %42 = arith.cmpi eq, %40, %41 : vector<8x128xi32>
    %cst_22 = arith.constant 0.000000e+00 : f32
    %43 = vector.shape_cast %39 : vector<1x128xf32> to vector<1x128xf32>
    %44 = vector.broadcast %43 : vector<1x128xf32> to vector<8x128xf32>
    %45 = vector.broadcast %cst_22 : f32 to vector<8x128xf32>
    %46 = arith.select %42, %44, %45 : vector<8x128xi1>, vector<8x128xf32>
    %c0_23 = arith.constant 0 : index
    %c0_24 = arith.constant 0 : index
    %c1_25 = arith.constant 1 : index
    %c0_26 = arith.constant 0 : index
    %c0_27 = arith.constant 0 : index
    %47 = vector.load %arg4[%c0_23, %c0_24, %c1_25, %c0_26, %c0_27] : memref<1x1x4x8x128xf32, #tpu.memory_space<vmem>>, vector<1x1x1x8x128xf32>
    %48 = vector.shape_cast %47 : vector<1x1x1x8x128xf32> to vector<8x128xf32>
    %49 = vector.shape_cast %46 : vector<8x128xf32> to vector<1x1x1x8x128xf32>
    tpu.vector_store %arg4[%c0_23, %c0_24, %c1_25, %c0_26, %c0_27], %49 {strides = array<i32>} : memref<1x1x4x8x128xf32, #tpu.memory_space<vmem>>, vector<1x1x1x8x128xf32>,
    %50 = arith.select %7, %20, %21 : vector<2x128xi1>, vector<2x128xf32>
    %cst_28 = arith.constant dense<0.000000e+00> : vector<128xf32>
    %51 = vector.multi_reduction <add>, %50, %cst_28 [0] : vector<2x128xf32> to vector<128xf32>
    %52 = vector.shape_cast %51 : vector<128xf32> to vector<1x128xf32>
    %53 = tpu.iota {dimensions = array<i32: 0>} : vector<8x128xi32>
    %c0_i32_29 = arith.constant 0 : i32
    %54 = vector.broadcast %c0_i32_29 : i32 to vector<8x128xi32>
    %55 = arith.cmpi eq, %53, %54 : vector<8x128xi32>
    %cst_30 = arith.constant 0.000000e+00 : f32
    %56 = vector.shape_cast %52 : vector<1x128xf32> to vector<1x128xf32>
    %57 = vector.broadcast %56 : vector<1x128xf32> to vector<8x128xf32>
    %58 = vector.broadcast %cst_30 : f32 to vector<8x128xf32>
    %59 = arith.select %55, %57, %58 : vector<8x128xi1>, vector<8x128xf32>
    %c0_31 = arith.constant 0 : index
    %c0_32 = arith.constant 0 : index
    %c2 = arith.constant 2 : index
    %c0_33 = arith.constant 0 : index
    %c0_34 = arith.constant 0 : index
    %60 = vector.load %arg4[%c0_31, %c0_32, %c2, %c0_33, %c0_34] : memref<1x1x4x8x128xf32, #tpu.memory_space<vmem>>, vector<1x1x1x8x128xf32>
    %61 = vector.shape_cast %60 : vector<1x1x1x8x128xf32> to vector<8x128xf32>
    %62 = vector.shape_cast %59 : vector<8x128xf32> to vector<1x1x1x8x128xf32>
    tpu.vector_store %arg4[%c0_31, %c0_32, %c2, %c0_33, %c0_34], %62 {strides = array<i32>} : memref<1x1x4x8x128xf32, #tpu.memory_space<vmem>>, vector<1x1x1x8x128xf32>,
    %63 = arith.subf %20, %10 : vector<2x128xf32>
    %64 = arith.select %9, %63, %21 : vector<2x128xi1>, vector<2x128xf32>
    %cst_35 = arith.constant dense<0.000000e+00> : vector<128xf32>
    %65 = vector.multi_reduction <add>, %64, %cst_35 [0] : vector<2x128xf32> to vector<128xf32>
    %66 = vector.shape_cast %65 : vector<128xf32> to vector<1x128xf32>
    %67 = tpu.iota {dimensions = array<i32: 0>} : vector<8x128xi32>
    %c0_i32_36 = arith.constant 0 : i32
    %68 = vector.broadcast %c0_i32_36 : i32 to vector<8x128xi32>
    %69 = arith.cmpi eq, %67, %68 : vector<8x128xi32>
    %cst_37 = arith.constant 0.000000e+00 : f32
    %70 = vector.shape_cast %66 : vector<1x128xf32> to vector<1x128xf32>
    %71 = vector.broadcast %70 : vector<1x128xf32> to vector<8x128xf32>
    %72 = vector.broadcast %cst_37 : f32 to vector<8x128xf32>
    %73 = arith.select %69, %71, %72 : vector<8x128xi1>, vector<8x128xf32>
    %c0_38 = arith.constant 0 : index
    %c0_39 = arith.constant 0 : index
    %c3 = arith.constant 3 : index
    %c0_40 = arith.constant 0 : index
    %c0_41 = arith.constant 0 : index
    %74 = vector.load %arg4[%c0_38, %c0_39, %c3, %c0_40, %c0_41] : memref<1x1x4x8x128xf32, #tpu.memory_space<vmem>>, vector<1x1x1x8x128xf32>
    %75 = vector.shape_cast %74 : vector<1x1x1x8x128xf32> to vector<8x128xf32>
    %76 = vector.shape_cast %73 : vector<8x128xf32> to vector<1x1x1x8x128xf32>
    tpu.vector_store %arg4[%c0_38, %c0_39, %c3, %c0_40, %c0_41], %76 {strides = array<i32>} : memref<1x1x4x8x128xf32, #tpu.memory_space<vmem>>, vector<1x1x1x8x128xf32>,
    return
  }
  func.func @transform_0(%arg0: i32, %arg1: i32) -> (i32, i32, i32, i32) {
    %c0_i32 = arith.constant 0 : i32
    %c0_i32_0 = arith.constant 0 : i32
    %c0_i32_1 = arith.constant 0 : i32
    return %arg1, %c0_i32, %arg0, %c0_i32_0 : i32, i32, i32, i32
  }
  func.func @transform_1(%arg0: i32, %arg1: i32) -> (i32, i32, i32) {
    %c0_i32 = arith.constant 0 : i32
    %c0_i32_0 = arith.constant 0 : i32
    return %arg1, %arg0, %c0_i32 : i32, i32, i32
  }
  func.func @transform_2(%arg0: i32, %arg1: i32) -> (i32, i32, i32, i32, i32) {
    %c0_i32 = arith.constant 0 : i32
    %c0_i32_0 = arith.constant 0 : i32
    %c0_i32_1 = arith.constant 0 : i32
    %c0_i32_2 = arith.constant 0 : i32
    return %arg0, %arg1, %c0_i32, %c0_i32_0, %c0_i32_1 : i32, i32, i32, i32, i32
  }
}

</mosaic_0001>

<bundles_post_ra>
// kernel: edge_loss.1
= control target key start
LH: loop header
LB: loop body
LE: loop exit
PB: predicated region body
PF: predicated region fallthrough
CT: control target
= control target key end

     0   :  { %s464_s9 = smov 0   ;;  %s466_s10 = smov 0   ;;  %s523_s0 = inlined_call_operand.vmem [shape: f32[2,2,2,128], index: 0, kind: input, shape index: {}]   ;;  %s524_s1 = inlined_call_operand.vmem [shape: s32[2,2,128], index: 1, kind: input, shape index: {}]   ;;  %s525_s2 = inlined_call_operand.vmem [shape: f32[1,2,4,8,128], index: 2, kind: output, shape index: {}]  }
   0x1   :  { %s468_s11 = smov 0  }
   0x2 LB: > { %s21_s12 = sadd.s32 1, %s442_s10  ;;  %p379_p0 = scmp.ge.s32.totalorder %s446_s11, 1  ;;  %s446_s11 = sphi %s468_s11, %s12_s11   ;;  %s442_s10 = sphi %s466_s10, %s527_s10   ;;  %s438_s9 = sphi %s464_s9, %s526_s9  }
   0x3   : > { %p22_p1 = scmp.ge.s32.totalorder %s21_s12, 2  ;;  %p145_p2 = scmp.lt.s32.totalorder %s446_s11, 3 }
   0x5   : > { %s529_s12 = smov (%p22_p1, %s21_s12), 0  ;;  %p146_p3 = pnand %p379_p0, %p145_p2 }
   0x6   : > { %p181_p4 = scmp.lt.s32.totalorder (!%p146_p3), %s438_s9, 1 }
   0x7   : > { %149 = sbr.rel (%p146_p3) target bundleno = 62 (0x3e), region = 28 }
   0xc   : > { %s531_s9 = smov (!%p181_p4, %s438_s9), 1  ;;  %vm223_vm0 = vcmask 1041408   ;;  %v448_v4 = vmov 0.0   ;;  %v231_v13 = vlaneseq }
   0xd   : > { %s393_s13 = sshll.u32 %s531_s9, 2  ;;  %s382_s14 = sshll.u32 %s531_s9, 1 }
   0xe   : > { %s188_s17 = scalar_lea.vmem %s523_s0, %s393_s13  ;;  %s195_s20 = scalar_lea.vmem %s524_s1, %s382_s14  ;;  %v232_v19 = vshrl.u32 %v231_v13, 7 }
   0xf   : > { %v205_v0 = vld [vmem:[%s188_s17] sm:$0x3]  ;;  %v385_v1 = vld [vmem:[%s188_s17 + $0x2] sm:$0x3]  ;;  %s394_s21 = sshll.u32 %s531_s9, 5 }
  0x10   : > { %v208_v2 = vld [vmem:[%s195_s20] sm:$0x3]  ;;  %v211_v3 = vsub.f32 %v385_v1, %v205_v0  ;;  %vm233_vm3 = vcmp.eq.s32.totalorder %v232_v19, 0  ;;  %s500_s24 = scalar_lea.vmem %s525_s2, %s394_s21 }
  0x11   : > { %vm209_vm1 = vcmp.eq.s32.totalorder %v208_v2, 0  ;;  %vm210_vm2 = vcmp.eq.s32.totalorder %v208_v2, 1 }
  0x12   : > { %v386_v5 = vsel %vm209_vm1, 1.0, %v448_v4  ;;  %v387_v6 = vsel %vm210_vm2, 1.0, %v448_v4  ;;  %v213_v7 = vand.u32 2147483647, %v211_v3  ;;  %v212_v30 = vmax.f32 %v211_v3, 0.0 }
  0x13   : > { %v224_v8 = vsel %vm223_vm0, %v386_v5, 0.0  ;;  %v238_v9 = vsel %vm223_vm0, %v387_v6, 0.0 }
  0x14   : > { %v225_v10 = vrot.slane %v224_v8, 4  ;;  %v239_v11 = vrot.slane %v238_v9, 4  ;;  %v214_v12 = vsub.f32 0.0, %v213_v7 }
  0x16   : > { %v226_v14 = vadd.f32 %v225_v10, %v224_v8  ;;  %v240_v15 = vadd.f32 %v239_v11, %v238_v9  ;;  %v215_v16 = vmul.f32 1.442695, %v214_v12 }
  0x18   : > { %v227_v17 = vrot.slane %v226_v14, 2  ;;  %v241_v18 = vrot.slane %v240_v15, 2  ;;  %420 = vpow2.f32 %v215_v16 }
  0x1a   : > { %v228_v20 = vadd.f32 %v227_v17, %v226_v14  ;;  %v242_v21 = vadd.f32 %v241_v18, %v240_v15 }
  0x1c   : > { %v229_v22 = vrot.slane %v228_v20, 1  ;;  %v243_v23 = vrot.slane %v242_v21, 1 }
  0x1e   : > { %v421_v24 = vpop.eup %420  ;;  %v230_v25 = vadd.f32 %v229_v22, %v228_v20  ;;  %v244_v26 = vadd.f32 %v243_v23, %v242_v21 }
  0x1f   : > { %v217_v27 = vadd.f32 1.0, %v421_v24 }
  0x20   : > { %v234_v28 = vsel %vm233_vm3, %v230_v25, 0.0  ;;  %v245_v29 = vsel %vm233_vm3, %v244_v26, 0.0 }
  0x21   : > { %235 = vst [vmem:[%s500_s24] sm:$0xff] %v234_v28  ;;  %422 = vlog2.f32 %v217_v27 }
  0x22   : > { %388 = vst [vmem:[%s500_s24 + $0x8] sm:$0xff] %v245_v29 }
  0x27   : > { %v423_v31 = vpop.eup %422 }
  0x28   : > { %v219_v32 = vmul.f32 0.6931472, %v423_v31 }
  0x2a   : > { %v220_v33 = vadd.f32 %v219_v32, %v212_v30 }
  0x2c   : > { %v248_v34 = vsel %vm209_vm1, %v220_v33, 0.0  ;;  %v259_v35 = vsub.f32 %v220_v33, %v211_v3 }
  0x2d   : > { %v249_v36 = vsel %vm223_vm0, %v248_v34, 0.0 }
  0x2e   : > { %v250_v37 = vrot.slane %v249_v36, 4  ;;  %v260_v38 = vsel %vm210_vm2, %v259_v35, 0.0 }
  0x2f   : > { %v261_v39 = vsel %vm223_vm0, %v260_v38, 0.0 }
  0x30   : > { %v251_v40 = vadd.f32 %v250_v37, %v249_v36  ;;  %v262_v41 = vrot.slane %v261_v39, 4 }
  0x32   : > { %v252_v42 = vrot.slane %v251_v40, 2  ;;  %v263_v43 = vadd.f32 %v262_v41, %v261_v39 }
  0x34   : > { %v253_v44 = vadd.f32 %v252_v42, %v251_v40  ;;  %v264_v45 = vrot.slane %v263_v43, 2 }
  0x36   : > { %v254_v46 = vrot.slane %v253_v44, 1  ;;  %v265_v47 = vadd.f32 %v264_v45, %v263_v43 }
  0x38   : > { %v255_v48 = vadd.f32 %v254_v46, %v253_v44  ;;  %v266_v49 = vrot.slane %v265_v47, 1 }
  0x3a   : > { %v256_v50 = vsel %vm233_vm3, %v255_v48, 0.0  ;;  %v267_v51 = vadd.f32 %v266_v49, %v265_v47 }
  0x3b   : > { %389 = vst [vmem:[%s500_s24 + $0x10] sm:$0xff] %v256_v50 }
  0x3c   : > { %v268_v52 = vsel %vm233_vm3, %v267_v51, 0.0 }
  0x3d   : > { %390 = vst [vmem:[%s500_s24 + $0x18] sm:$0xff] %v268_v52 }
  0x3e PF: > { %s12_s11 = sadd.s32 1, %s446_s11   ;;  %s526_s9 = smov %s442_s10 }
  0x3f   : > { %p9_p5 = scmp.ge.s32.totalorder %s12_s11, 4   ;;  %s527_s10 = smov %s529_s12 }
  0x41   :  { %11 = sbr.rel (!%p9_p5) target bundleno = 2 (0x2), region = 65 }

</bundles_post_ra>
